<compile_context>
chip_gen: v7x
topology: tpu7x:2x2x1
jax: 0.10.0
libtpu: 0.0.40
codegen_flags: <defaults>
</compile_context>

<pallas_src>
import functools

import jax
import jax.numpy as jnp
from jax.experimental import pallas as pl
from jax.experimental.pallas import tpu as pltpu


def _adaptive_bins(in_size, out_size):
    """PyTorch adaptive pooling bin boundaries (static python ints)."""
    bins = []
    for i in range(out_size):
        start = (i * in_size) // out_size
        end = ((i + 1) * in_size + out_size - 1) // out_size  # ceil
        bins.append((start, end))
    return bins


def _fused_fc1_weights(w1, c_in, c_out):
    """Fold the adaptive channel avg-pool into fc1.

    fc1(avgpool(x))[t,h,w] = sum_i w1[i] * mean_{c in bin_i} x[c]
                           = sum_c x[c] * (sum_{i: c in bin_i} w1[i]/len_i)
    (bins may overlap when c_in % c_out != 0 — handled by the additive fold).
    """
    w1f = jnp.zeros((c_in,), dtype=jnp.float32)
    for i, (s, e) in enumerate(_adaptive_bins(c_in, c_out)):
        w1f = w1f.at[s:e].add(w1[i].astype(jnp.float32) / float(e - s))
    return w1f


def _vmem_caps():
    """(tile budget, vmem_limit_bytes) sized to the actual TPU generation."""
    try:
        cap = int(pltpu.get_tpu_info().vmem_capacity_bytes)
    except Exception:  # conservative fallback: assume smallest (v7x-like 64 MiB)
        cap = 64 << 20
    budget = int(min(32 << 20, max(8 << 20, cap // 4)))      # pipelined buffers
    limit = int(min(cap // 2, budget + (8 << 20)))            # scoped VMEM limit
    return budget, limit


def _pick_t_block(c_in, c_out, t, hw, dtype_bytes, budget_bytes, sublane,
                  want_t_tiles=1):
    """Largest legal T tile whose pipelined blocks + intermediates fit budget."""
    # double-buffered in + out blocks, plus f32 kernel intermediates per T row
    per_t = ((2 * c_in + 2 * c_out) * hw * dtype_bytes
             + (c_in + 2 * c_out + 2) * hw * 4)
    tb = t
    if t * per_t > budget_bytes:
        tb = (budget_bytes // per_t) // sublane * sublane
        tb = min(t, max(sublane, tb))
    # Keep >=want_t_tiles grid steps along T (v7x megacore) when T allows it.
    if want_t_tiles > 1:
        cap = (t // want_t_tiles) // sublane * sublane
        if cap >= sublane:
            tb = min(tb, cap)
    if tb >= t:
        return t            # full axis: block dim == array dim is always legal
    if tb % sublane != 0:   # T too small to tile on sublane granularity
        return t
    return tb


def channel_attention_kernel(w1f_ref, w2f_ref, x_ref, o_ref, *, c_in, c_out):
    # x_ref block: (1, c_in, t_block, hw_pad).  Compute in f32, cast on store.
    x = x_ref[0].astype(jnp.float32)                       # (c_in, tt, hw)

    # ---- fused adaptive avg-pool (c_in -> c_out) + fc1 (c_out -> 1) ---------
    # Pool divisors are pre-folded into w1f; pairwise tree sum keeps the
    # dependent VALU-add chain at depth log2(c_in).
    terms = [x[c] * w1f_ref[c] for c in range(c_in)]
    while len(terms) > 1:
        nxt = [terms[i] + terms[i + 1] for i in range(0, len(terms) - 1, 2)]
        if len(terms) % 2:
            nxt.append(terms[-1])
        terms = nxt
    y1 = jnp.maximum(terms[0], 0.0)                        # ReLU, (tt, hw)

    # ---- max branch ----------------------------------------------------------
    # The adaptive max pool runs on the already avg-pooled tensor
    # (c_out -> c_out bins of size 1): it is the identity, so max_out == avg_out
    # and the (avg + max) == 2x factor is pre-folded into w2f on the host.

    # ---- fc2 (1 -> c_out) then sigmoid gate, single lane-dense block store ---
    s = jnp.stack([w2f_ref[c] * y1 for c in range(c_out)], axis=0)
    o_ref[0] = (jax.nn.sigmoid(s) * s).astype(o_ref.dtype)


def channel_attention(x, w1, w2, out_channels, *, t_block=None):
    """x: (N, C, T, H, W); w1, w2: (out_channels,) 1x1x1 conv weights."""
    n, c_in, t, h, w = x.shape
    c_out = out_channels
    hw = h * w
    hw_pad = ((hw + 127) // 128) * 128                     # lane-dense last dim

    x2 = x.reshape(n, c_in, t, hw)
    if hw_pad != hw:
        # zero padding -> gated output is exactly 0 there (no NaN/Inf), sliced off
        x2 = jnp.pad(x2, ((0, 0), (0, 0), (0, 0), (0, hw_pad - hw)))

    # Host-side weight folding: pooling divisors into fc1, 2x (avg+max) into fc2.
    w1f = _fused_fc1_weights(w1, c_in, c_out)
    w2f = (2.0 * w2).astype(jnp.float32)

    sublane = max(8, 32 // x.dtype.itemsize)               # 8 for f32, 16 for bf16
    budget, vmem_limit = _vmem_caps()
    if t_block is None:
        want_t_tiles = 2 if n < 2 else 1                   # feed both v7x cores
        t_block = _pick_t_block(c_in, c_out, t, hw_pad, x.dtype.itemsize,
                                budget, sublane, want_t_tiles)

    grid = (n, pl.cdiv(t, t_block))
    kern = functools.partial(channel_attention_kernel, c_in=c_in, c_out=c_out)

    out = pl.pallas_call(
        kern,
        out_shape=jax.ShapeDtypeStruct((n, c_out, t, hw_pad), x.dtype),
        grid_spec=pltpu.PrefetchScalarGridSpec(
            num_scalar_prefetch=2,                          # w1f, w2f in SMEM
            grid=grid,
            in_specs=[pl.BlockSpec((1, c_in, t_block, hw_pad),
                                   lambda i, j, w1f_s, w2f_s: (i, 0, j, 0))],
            out_specs=pl.BlockSpec((1, c_out, t_block, hw_pad),
                                   lambda i, j, w1f_s, w2f_s: (i, 0, j, 0)),
        ),
        # Batch and T-tile steps are independent -> megacore shardable on v7x.
        compiler_params=pltpu.CompilerParams(
            dimension_semantics=("parallel", "parallel"),
            vmem_limit_bytes=vmem_limit),
    )(w1f, w2f, x2)

    if hw_pad != hw:
        out = out[..., :hw]
    return out.reshape(n, c_out, t, h, w)


def ref_channel_attention(x, w1, w2, c_out):
    """Pure-JAX reference mirroring the PyTorch forward exactly (no shortcuts)."""
    n, c_in, t, h, w = x.shape
    abins = _adaptive_bins(c_in, c_out)
    xa = jnp.stack([x[:, s:e].mean(axis=1) for (s, e) in abins], axis=1)
    mbins = _adaptive_bins(c_out, c_out)
    xm = jnp.stack([xa[:, s:e].max(axis=1) for (s, e) in mbins], axis=1)

    def fc(z):
        y1 = jnp.einsum("c,ncthw->nthw", w1, z)
        y1 = jnp.maximum(y1, 0.0)
        return jnp.einsum("c,nthw->ncthw", w2, y1)

    out = fc(xa) + fc(xm)
    return jax.nn.sigmoid(out) * out


if __name__ == "__main__":
    # Module config: ChannelAttention(out_channels=4, kernel_size=1)
    out_channels = 4
    N, C, T, H, W = 2, 8, 4, 8, 16   # H*W = 128 -> exactly one lane row per (c,t)

    key = jax.random.PRNGKey(0)
    kx, k1, k2 = jax.random.split(key, 3)
    x = jax.random.normal(kx, (N, C, T, H, W), dtype=jnp.float32)

    # Deterministic parameter init (shapes from nn.Conv3d with kernel_size=1):
    #   fc1.weight: (1, out_channels, 1, 1, 1) -> (out_channels,)
    #   fc2.weight: (out_channels, 1, 1, 1, 1) -> (out_channels,)
    w1 = (jax.random.normal(k1, (out_channels,), dtype=jnp.float32)
          / jnp.sqrt(out_channels))
    w2 = jax.random.normal(k2, (out_channels,), dtype=jnp.float32)

    out = channel_attention(x, w1, w2, out_channels)
    out = jax.block_until_ready(out)

    ref = ref_channel_attention(x, w1, w2, out_channels)
    assert out.shape == (N, out_channels, T, H, W)
    assert jnp.allclose(out, ref, atol=2e-5, rtol=2e-5), "mismatch vs reference"

    print("KERNEL_OK")
</pallas_src>

<mosaic_0001>
module attributes {stable_mosaic.version = 11 : i64} {
  func.func @channel_attention_kernel(%arg0: i32, %arg1: i32, %arg2: memref<8xf32, #tpu.memory_space<smem>>, %arg3: memref<4xf32, #tpu.memory_space<smem>>, %arg4: memref<1x8x4x128xf32, #tpu.memory_space<vmem>>, %arg5: memref<1x4x4x128xf32, #tpu.memory_space<vmem>>) attributes {dimension_semantics = [#tpu.dimension_semantics<parallel>, #tpu.dimension_semantics<parallel>], iteration_bounds = array<i64: 2, 1>, scalar_prefetch = 2 : i64, scratch_operands = 0 : i64, tpu.core_type = #tpu.core_type<tc>, window_params = [{transform_indices = @transform_0, window_bounds = array<i64: 1, 8, 4, 128>}, {transform_indices = @transform_1, window_bounds = array<i64: 1, 4, 4, 128>}]} {
    %c0 = arith.constant 0 : index
    %c0_0 = arith.constant 0 : index
    %c0_1 = arith.constant 0 : index
    %c0_2 = arith.constant 0 : index
    %0 = vector.load %arg4[%c0, %c0_0, %c0_1, %c0_2] : memref<1x8x4x128xf32, #tpu.memory_space<vmem>>, vector<1x8x4x128xf32>
    %1 = vector.shape_cast %0 : vector<1x8x4x128xf32> to vector<8x4x128xf32>
    %2 = vector.extract_strided_slice %1 {offsets = [0, 0, 0], sizes = [1, 4, 128], strides = [1, 1, 1]} : vector<8x4x128xf32> to vector<1x4x128xf32>
    %3 = vector.shape_cast %2 : vector<1x4x128xf32> to vector<4x128xf32>
    %c0_3 = arith.constant 0 : index
    %4 = memref.load %arg2[%c0_3] : memref<8xf32, #tpu.memory_space<smem>>
    %5 = vector.broadcast %4 : f32 to vector<4x128xf32>
    %6 = arith.mulf %3, %5 : vector<4x128xf32>
    %7 = vector.extract_strided_slice %1 {offsets = [1, 0, 0], sizes = [1, 4, 128], strides = [1, 1, 1]} : vector<8x4x128xf32> to vector<1x4x128xf32>
    %8 = vector.shape_cast %7 : vector<1x4x128xf32> to vector<4x128xf32>
    %c1 = arith.constant 1 : index
    %9 = memref.load %arg2[%c1] : memref<8xf32, #tpu.memory_space<smem>>
    %10 = vector.broadcast %9 : f32 to vector<4x128xf32>
    %11 = arith.mulf %8, %10 : vector<4x128xf32>
    %12 = vector.extract_strided_slice %1 {offsets = [2, 0, 0], sizes = [1, 4, 128], strides = [1, 1, 1]} : vector<8x4x128xf32> to vector<1x4x128xf32>
    %13 = vector.shape_cast %12 : vector<1x4x128xf32> to vector<4x128xf32>
    %c2 = arith.constant 2 : index
    %14 = memref.load %arg2[%c2] : memref<8xf32, #tpu.memory_space<smem>>
    %15 = vector.broadcast %14 : f32 to vector<4x128xf32>
    %16 = arith.mulf %13, %15 : vector<4x128xf32>
    %17 = vector.extract_strided_slice %1 {offsets = [3, 0, 0], sizes = [1, 4, 128], strides = [1, 1, 1]} : vector<8x4x128xf32> to vector<1x4x128xf32>
    %18 = vector.shape_cast %17 : vector<1x4x128xf32> to vector<4x128xf32>
    %c3 = arith.constant 3 : index
    %19 = memref.load %arg2[%c3] : memref<8xf32, #tpu.memory_space<smem>>
    %20 = vector.broadcast %19 : f32 to vector<4x128xf32>
    %21 = arith.mulf %18, %20 : vector<4x128xf32>
    %22 = vector.extract_strided_slice %1 {offsets = [4, 0, 0], sizes = [1, 4, 128], strides = [1, 1, 1]} : vector<8x4x128xf32> to vector<1x4x128xf32>
    %23 = vector.shape_cast %22 : vector<1x4x128xf32> to vector<4x128xf32>
    %c4 = arith.constant 4 : index
    %24 = memref.load %arg2[%c4] : memref<8xf32, #tpu.memory_space<smem>>
    %25 = vector.broadcast %24 : f32 to vector<4x128xf32>
    %26 = arith.mulf %23, %25 : vector<4x128xf32>
    %27 = vector.extract_strided_slice %1 {offsets = [5, 0, 0], sizes = [1, 4, 128], strides = [1, 1, 1]} : vector<8x4x128xf32> to vector<1x4x128xf32>
    %28 = vector.shape_cast %27 : vector<1x4x128xf32> to vector<4x128xf32>
    %c5 = arith.constant 5 : index
    %29 = memref.load %arg2[%c5] : memref<8xf32, #tpu.memory_space<smem>>
    %30 = vector.broadcast %29 : f32 to vector<4x128xf32>
    %31 = arith.mulf %28, %30 : vector<4x128xf32>
    %32 = vector.extract_strided_slice %1 {offsets = [6, 0, 0], sizes = [1, 4, 128], strides = [1, 1, 1]} : vector<8x4x128xf32> to vector<1x4x128xf32>
    %33 = vector.shape_cast %32 : vector<1x4x128xf32> to vector<4x128xf32>
    %c6 = arith.constant 6 : index
    %34 = memref.load %arg2[%c6] : memref<8xf32, #tpu.memory_space<smem>>
    %35 = vector.broadcast %34 : f32 to vector<4x128xf32>
    %36 = arith.mulf %33, %35 : vector<4x128xf32>
    %37 = vector.extract_strided_slice %1 {offsets = [7, 0, 0], sizes = [1, 4, 128], strides = [1, 1, 1]} : vector<8x4x128xf32> to vector<1x4x128xf32>
    %38 = vector.shape_cast %37 : vector<1x4x128xf32> to vector<4x128xf32>
    %c7 = arith.constant 7 : index
    %39 = memref.load %arg2[%c7] : memref<8xf32, #tpu.memory_space<smem>>
    %40 = vector.broadcast %39 : f32 to vector<4x128xf32>
    %41 = arith.mulf %38, %40 : vector<4x128xf32>
    %42 = arith.addf %6, %11 : vector<4x128xf32>
    %43 = arith.addf %16, %21 : vector<4x128xf32>
    %44 = arith.addf %26, %31 : vector<4x128xf32>
    %45 = arith.addf %36, %41 : vector<4x128xf32>
    %46 = arith.addf %42, %43 : vector<4x128xf32>
    %47 = arith.addf %44, %45 : vector<4x128xf32>
    %48 = arith.addf %46, %47 : vector<4x128xf32>
    %cst = arith.constant 0.000000e+00 : f32
    %49 = vector.broadcast %cst : f32 to vector<4x128xf32>
    %50 = arith.maximumf %48, %49 : vector<4x128xf32>
    %c0_4 = arith.constant 0 : index
    %51 = memref.load %arg3[%c0_4] : memref<4xf32, #tpu.memory_space<smem>>
    %52 = vector.broadcast %51 : f32 to vector<4x128xf32>
    %53 = arith.mulf %52, %50 : vector<4x128xf32>
    %c1_5 = arith.constant 1 : index
    %54 = memref.load %arg3[%c1_5] : memref<4xf32, #tpu.memory_space<smem>>
    %55 = vector.broadcast %54 : f32 to vector<4x128xf32>
    %56 = arith.mulf %55, %50 : vector<4x128xf32>
    %c2_6 = arith.constant 2 : index
    %57 = memref.load %arg3[%c2_6] : memref<4xf32, #tpu.memory_space<smem>>
    %58 = vector.broadcast %57 : f32 to vector<4x128xf32>
    %59 = arith.mulf %58, %50 : vector<4x128xf32>
    %c3_7 = arith.constant 3 : index
    %60 = memref.load %arg3[%c3_7] : memref<4xf32, #tpu.memory_space<smem>>
    %61 = vector.broadcast %60 : f32 to vector<4x128xf32>
    %62 = arith.mulf %61, %50 : vector<4x128xf32>
    %63 = vector.shape_cast %53 : vector<4x128xf32> to vector<1x4x128xf32>
    %64 = vector.shape_cast %56 : vector<4x128xf32> to vector<1x4x128xf32>
    %65 = vector.shape_cast %59 : vector<4x128xf32> to vector<1x4x128xf32>
    %66 = vector.shape_cast %62 : vector<4x128xf32> to vector<1x4x128xf32>
    %67 = tpu.concatenate %63, %64, %65, %66 in 0 : vector<1x4x128xf32>, vector<1x4x128xf32>, vector<1x4x128xf32>, vector<1x4x128xf32> -> vector<4x4x128xf32>
    %68 = arith.negf %67 : vector<4x4x128xf32>
    %69 = math.exp %68 : vector<4x4x128xf32>
    %cst_8 = arith.constant 1.000000e+00 : f32
    %70 = vector.broadcast %cst_8 : f32 to vector<4x4x128xf32>
    %71 = arith.addf %70, %69 : vector<4x4x128xf32>
    %72 = arith.divf %70, %71 : vector<4x4x128xf32>
    %73 = arith.mulf %72, %67 : vector<4x4x128xf32>
    %c0_9 = arith.constant 0 : index
    %c0_10 = arith.constant 0 : index
    %c0_11 = arith.constant 0 : index
    %c0_12 = arith.constant 0 : index
    %74 = vector.load %arg5[%c0_9, %c0_10, %c0_11, %c0_12] : memref<1x4x4x128xf32, #tpu.memory_space<vmem>>, vector<1x4x4x128xf32>
    %75 = vector.shape_cast %74 : vector<1x4x4x128xf32> to vector<4x4x128xf32>
    %76 = vector.shape_cast %73 : vector<4x4x128xf32> to vector<1x4x4x128xf32>
    tpu.vector_store %arg5[%c0_9, %c0_10, %c0_11, %c0_12], %76 {strides = array<i32>} : memref<1x4x4x128xf32, #tpu.memory_space<vmem>>, vector<1x4x4x128xf32>,
    return
  }
  func.func @transform_0(%arg0: i32, %arg1: i32, %arg2: memref<8xf32, #tpu.memory_space<smem>>, %arg3: memref<4xf32, #tpu.memory_space<smem>>) -> (i32, i32, i32, i32) {
    %c0_i32 = arith.constant 0 : i32
    %c0_i32_0 = arith.constant 0 : i32
    %c0_i32_1 = arith.constant 0 : i32
    return %arg0, %c0_i32, %arg1, %c0_i32_0 : i32, i32, i32, i32
  }
  func.func @transform_1(%arg0: i32, %arg1: i32, %arg2: memref<8xf32, #tpu.memory_space<smem>>, %arg3: memref<4xf32, #tpu.memory_space<smem>>) -> (i32, i32, i32, i32) {
    %c0_i32 = arith.constant 0 : i32
    %c0_i32_0 = arith.constant 0 : i32
    %c0_i32_1 = arith.constant 0 : i32
    return %arg0, %c0_i32, %arg1, %c0_i32_0 : i32, i32, i32, i32
  }
}

</mosaic_0001>

<bundles_post_ra>
// kernel: tpu_custom_call.1
= control target key start
LH: loop header
LB: loop body
LE: loop exit
PB: predicated region body
PF: predicated region fallthrough
CT: control target
= control target key end

     0   :  { %s818_s0 = inlined_call_operand.hbm [shape: f32[8], index: 0, kind: input, shape index: {}]   ;;  %s819_s2 = inlined_call_operand.hbm [shape: f32[2,8,4,128], index: 2, kind: input, shape index: {}]   ;;  %s820_s3 = inlined_call_operand.hbm [shape: f32[2,4,4,128], index: 3, kind: output, shape index: {}]   ;;  %s821_s1 = inlined_call_operand.vmem [shape: f32[4], index: 1, kind: input, shape index: {}]  }
   0x1   :  { %s461_s14 = scalar_lea.hbm %s818_s0, 16 }
   0x2   :  { %p462_p0 = scmp.ne.s32.totalorder %s818_s0, %s461_s14  ;;  %p465_p1 = scmp.lt.u32.totalorder %s461_s14, %s818_s0 }
   0x4   :  { %p467_p2 = pnand %p465_p1, %p462_p0 }
   0x6   :  { %470 = shalt.err (!%p467_p2)  }
   0x7   :  { %s599_s19 = smov [#allocation3]   ;;  %s10_s24 = sshll.u32 %s821_s1, 4  ;;  %s11_s24 = int_to_ptr.vmem [resolvable:$true] %s10_s24 }
   0x8   :  { %9 = dma.hbm_to_smem %s818_s0, 16, %s599_s19, [#allocation2] }
   0x9   :  { %s471_s25 = scalar_lea.vmem %s11_s24, 16  ;;  %p476_p4 = scmp.lt.s32.totalorder %s11_s24, %s11_s24 }
   0xa   :  { %p472_p3 = scmp.ne.s32.totalorder %s11_s24, %s471_s25  ;;  %p477_p5 = scmp.lt.s32.totalorder %s471_s25, %s471_s25 }
   0xc   :  { %p478_p6 = por %p477_p5, %p476_p4 }
   0xe   :  { %p479_p7 = pnand %p478_p6, %p472_p3 }
  0x10   :  { %482 = shalt.err (!%p479_p7)  }
  0x11   :  { %s600_s26 = smov [#allocation4]  }
  0x12   :  { %13 = dma.vmem_to_smem %s11_s24, 16, %s600_s26, [#allocation2] }
  0x13   :  { %565 = dma.done.wait [#allocation2], 32 }
  0x14   :  { %566 = vsyncadd [#allocation2], 4294967264 }
  0x15   :  { %15 = sfence }
  0x16   :  { %16 = vsyncpa [#allocation6], 0 }
  0x17   :  { %18 = vsyncpa [#allocation6 + $0x1], 0 }
  0x18   :  { %19 = vsyncpa [#allocation7], 0 }
  0x19   :  { %21 = vsyncpa [#allocation7 + $0x1], 0  ;;  %s642_s0 = smov 0   ;;  %s644_s1 = smov 0  }
  0x1a   :  { %s646_s27 = smov 0   ;;  %s648_s28 = smov 0  }
  0x1b   :  { %s650_s29 = smov 0   ;;  %s652_s30 = smov 0  }
  0x1c LB: > { %s346_s4 = sadd.s32 4294967295, %s597_s30   ;;  %s347_s5 = sadd.s32 4294967294, %s597_s30   ;;  %s597_s30 = sphi %s652_s30, %s27_s30   ;;  %s593_s29 = sphi %s650_s29, %s836_s29   ;;  %s589_s28 = sphi %s648_s28, %s835_s28   ;;  %s585_s27 = sphi %s646_s27, %s834_s27   ;;  %s581_s1 = sphi %s644_s1, %s833_s1   ;;  %s577_s0 = sphi %s642_s0, %s832_s0  }
  0x1d   : > { %s39_s6 = sadd.s32 1, %s593_s29  ;;  %s48_s7 = sadd.s32 1, %s585_s27 }
  0x1e   : > { %p41_p8 = scmp.ge.s32.totalorder %s39_s6, 2  ;;  %p55_p9 = scmp.ne.s32.totalorder %s585_s27, %s581_s1 }
  0x1f   : > { %p56_p10 = scmp.eq.s32.totalorder %s597_s30, 0  ;;  %p61_p11 = scmp.ne.s32.totalorder %s581_s1, %s577_s0 }
  0x20   : > { %s838_s6 = smov (%p41_p8, %s39_s6), 0  ;;  %p62_p13 = scmp.eq.s32.totalorder %s346_s4, 0 }
  0x21   : > { %p683_p12 = por %p56_p10, %p55_p9  ;;  %s43_s9 = ssub.s32 %s593_s29, %s838_s6 }
  0x22   : > { %p87_p0 = scmp.eq.s32.totalorder %s346_s4, 1  ;;  %p46_p1 = scmp.eq.s32.totalorder %s43_s9, 0 }
  0x23   : > { %p689_p2 = por %p62_p13, %p61_p11  ;;  %p93_p4 = scmp.eq.s32.totalorder %s347_s5, 1 }
  0x24   : > { %p693_p3 = por %p87_p0, %p55_p9  ;;  %p389_p7 = scmp.lt.s32.totalorder %s597_s30, 2 }
  0x25   : > { %s698_s12 = scalar_select %p46_p1, %s585_s27, %s48_s7  }
  0x26   : > { %s825_s11 = scalar_select %p693_p3, 1, 0 }
  0x27   : > { %p700_p5 = por %p93_p4, %p61_p11  ;;  %s113_s14 = sand.u32 1, %s585_s27  }
  0x28   : > { %s350_s15 = sshll.u32 %s113_s14, 5  ;;  %s375_s16 = sshll.u32 %s593_s29, 9 }
  0x29   : > { %s826_s13 = scalar_select %p700_p5, 1, 0 }
  0x2a   : > { %s711_s19 = scalar_lea.hbm %s819_s2, %s375_s16  ;;  %s117_s20 = scalar_lea.vmem [#allocation5], %s350_s15 }
  0x2b   : > { %s125_s21 = sshll.u32 %s117_s20, 4  ;;  %p717_p8 = pnand %p389_p7, %p683_p12  ;;  %s713_s21 = int_to_ptr.vmem [resolvable:$true] %s125_s21 }
  0x2c   : > { %s722_s23 = scalar_lea.sflag [#allocation6], %s113_s14  ;;  %s483_s24 = scalar_lea.hbm %s711_s19, 512 }
  0x2d   : > { %p484_p10 = scmp.ne.s32.totalorder %s711_s19, %s483_s24  ;;  %p485_p11 = pneg %p717_p8 }
  0x2e   : > { %s488_s4 = scalar_lea.hbm %s819_s2, 1024  ;;  %p489_p12 = scmp.lt.u32.totalorder %s711_s19, %s819_s2 }
  0x2f   : > { %p486_p13 = pnand %p485_p11, %p484_p10  ;;  %p490_p1 = scmp.lt.u32.totalorder %s488_s4, %s483_s24 }
  0x30   : > { %p492_p7 = scmp.lt.u32.totalorder %s483_s24, %s711_s19 }
  0x31   : > { %p487_p0 = pneg %p486_p13  ;;  %p491_p4 = por %p490_p1, %p489_p12 }
  0x33   : > { %p493_p6 = por %p492_p7, %p491_p4 }
  0x35   : > { %p494_p9 = pnand %p493_p6, %p487_p0 }
  0x37   : > { %497 = shalt.err (!%p494_p9)
}
  0x38   : > { %s498_s8 = scalar_lea.vmem %s713_s21, 512  ;;  %s601_s9 = smov [#allocation5]  }
  0x39   : > { %p499_p10 = scmp.ne.s32.totalorder %s713_s21, %s498_s8  ;;  %s503_s14 = sshll.u32 %s601_s9, 4  ;;  %s504_s14 = int_to_ptr.vmem [resolvable:$false] %s503_s14 }
  0x3a   : > { %s505_s15 = scalar_lea.vmem %s504_s14, 1024  ;;  %p506_p3 = scmp.lt.s32.totalorder %s713_s21, %s504_s14 }
  0x3b   : > { %p501_p13 = pnand %p499_p10, %p485_p11  ;;  %p507_p12 = scmp.lt.s32.totalorder %s505_s15, %s498_s8 }
  0x3d   : > { %p502_p5 = pneg %p501_p13  ;;  %p508_p1 = por %p507_p12, %p506_p3 }
  0x3f   : > { %p509_p4 = pnand %p508_p1, %p502_p5 }
  0x41   : > { %512 = shalt.err (!%p509_p4)
}
  0x42   : > { %s602_s16 = smov 64   ;;  %s603_s17 = smov 4  }
  0x43   : > { %384 = dma.hbm_to_vmem [thread:$0]  (!%p717_p8), %s711_s19, 512, %s713_s21, %s722_s23, %s602_s16, %s602_s16, %s603_s17  }
  0x44   : > { %p133_p6 = scmp.lt.s32.totalorder %s597_s30, 3  ;;  %p828_p9 = scmp.ge.s32.totalorder %s597_s30, 1 }
  0x46   : > { %p134_p11 = pnand %p828_p9, %p133_p6 }
  0x47   : > { %s754_s18 = sand.u32 (!%p134_p11), 1, %s581_s1  }
  0x48   : > { %137 = sbr.rel (%p134_p11) target bundleno = 148 (0x94), region = 24  ;;  %s354_s20 = sshll.u32 (!%p134_p11), %s754_s18, 5 }
  0x49   : > { %s140_s24 = scalar_lea.sflag (!%p134_p11), [#allocation6], %s754_s18  ;;  %s143_s25 = scalar_lea.vmem (!%p134_p11), [#allocation5], %s354_s20 }
  0x4f   : > { %568 = dma.done.wait (%p689_p2), %s140_s24, 512  }
  0x50   : > { %570 = vsyncadd (%p689_p2), %s140_s24, 4294966784  ;;  %s170_s22 = sld [smem:[#allocation3]]  ;;  %s356_s19 = sld [smem:[#allocation3 + $0x1]]  ;;  %v162_v0 = vld [vmem:[%s143_s25] sm:$0xf] }
  0x51   : > { %s357_s21 = sld [smem:[#allocation3 + $0x2]]  ;;  %s358_s23 = sld [smem:[#allocation3 + $0x3]]  ;;  %v163_v1 = vld [vmem:[%s143_s25 + $0x4] sm:$0xf]  ;;  %v164_v2 = vld [vmem:[%s143_s25 + $0x8] sm:$0xf] }
  0x52   : > { %s359_s26 = sld [smem:[#allocation3 + $0x4]]  ;;  %s360_s4 = sld [smem:[#allocation3 + $0x5]]  ;;  %v165_v4 = vld [vmem:[%s143_s25 + $0xc] sm:$0xf]  ;;  %v166_v5 = vld [vmem:[%s143_s25 + $0x10] sm:$0xf] }
  0x53   : > { %s361_s5 = sld [smem:[#allocation3 + $0x6]]  ;;  %s362_s7 = sld [smem:[#allocation3 + $0x7]]  ;;  %v167_v6 = vld [vmem:[%s143_s25 + $0x14] sm:$0xf]  ;;  %v168_v9 = vld [vmem:[%s143_s25 + $0x18] sm:$0xf] }
  0x54   : > { %v169_v10 = vld [vmem:[%s143_s25 + $0x1c] sm:$0xf]  ;;  %s202_s10 = sld [smem:[#allocation4]]  ;;  %s363_s8 = sld [smem:[#allocation4 + $0x1]] }
  0x55   : > { %s364_s9 = sld [smem:[#allocation4 + $0x2]]  ;;  %s365_s14 = sld [smem:[#allocation4 + $0x3]] }
  0x56   : > { %v171_v3 = vstv %s170_s22  ;;  %v174_v8 = vstv %s356_s19  ;;  %s355_s15 = sshll.u32 %s754_s18, 4  ;;  %s376_s20 = sshll.u32 %s589_s28, 8 }
  0x57   : > { %v172_v7 = vmul.f32 %v171_v3, %v162_v0  ;;  %v175_v11 = vmul.f32 %v174_v8, %v163_v1  ;;  %v177_v12 = vstv %s357_s21  ;;  %v180_v13 = vstv %s358_s23  ;;  %s161_s16 = scalar_lea.vmem [#allocation8], %s355_s15  ;;  %s769_s22 = scalar_lea.hbm %s820_s3, %s376_s20 }
  0x58   : > { %v178_v14 = vmul.f32 %v177_v12, %v164_v2  ;;  %v181_v15 = vmul.f32 %v180_v13, %v165_v4  ;;  %v183_v16 = vstv %s359_s26  ;;  %v186_v17 = vstv %s360_s4  ;;  %s261_s17 = sshll.u32 %s161_s16, 4  ;;  %s247_s28 = scalar_lea.sflag [#allocation7], %s754_s18  ;;  %s764_s17 = int_to_ptr.vmem [resolvable:$true] %s261_s17 }
  0x59   : > { %v184_v18 = vmul.f32 %v183_v16, %v166_v5  ;;  %v187_v19 = vmul.f32 %v186_v17, %v167_v6  ;;  %v189_v20 = vstv %s361_s5  ;;  %v192_v21 = vstv %s362_s7  ;;  %s513_s19 = scalar_lea.vmem %s764_s17, 256  ;;  %p829_p3 = scmp.ne.s32.totalorder %s825_s11, 0 }
  0x5a   : > { %v190_v22 = vmul.f32 %v189_v20, %v168_v9  ;;  %v193_v23 = vmul.f32 %v192_v21, %v169_v10  ;;  %v194_v24 = vadd.f32 %v175_v11, %v172_v7  ;;  %v195_v25 = vadd.f32 %v181_v15, %v178_v14  ;;  %p514_p2 = scmp.ne.s32.totalorder %s764_s17, %s513_s19  ;;  %s604_s21 = smov [#allocation8]  }
  0x5b   : > { %v196_v26 = vadd.f32 %v187_v19, %v184_v18  ;;  %v203_v31 = vstv %s202_s10  ;;  %v206_v32 = vstv %s363_s8  ;;  %v209_v33 = vstv %s364_s9  ;;  %s517_s23 = sshll.u32 %s604_s21, 4  ;;  %s518_s23 = int_to_ptr.vmem [resolvable:$false] %s517_s23 }
  0x5c   : > { %v197_v27 = vadd.f32 %v193_v23, %v190_v22  ;;  %v198_v28 = vadd.f32 %v195_v25, %v194_v24  ;;  %v212_v34 = vstv %s365_s14  ;;  %p515_p5 = pnand %p514_p2, %p829_p3  ;;  %s519_s26 = scalar_lea.vmem %s518_s23, 512 }
  0x5d   : > { %p520_p0 = scmp.lt.s32.totalorder %s764_s17, %s518_s23  ;;  %p521_p7 = scmp.lt.s32.totalorder %s519_s26, %s513_s19 }
  0x5e   : > { %v199_v29 = vadd.f32 %v197_v27, %v196_v26  ;;  %p516_p8 = pneg %p515_p5 }
  0x5f   : > { %p522_p10 = por %p521_p7, %p520_p0 }
  0x60   : > { %v200_v30 = vadd.f32 %v199_v29, %v198_v28 }
  0x61   : > { %p523_p13 = pnand %p522_p10, %p516_p8 }
  0x62   : > { %v201_v35 = vmax.f32 %v200_v30, 0.0 }
  0x64   : > { %v204_v36 = vmul.f32 %v203_v31, %v201_v35  ;;  %v207_v37 = vmul.f32 %v206_v32, %v201_v35  ;;  %v210_v38 = vmul.f32 %v209_v33, %v201_v35  ;;  %v213_v39 = vmul.f32 %v212_v34, %v201_v35 }
  0x66   : > { %v366_v40 = vmul.f32 -1.442695, %v204_v36  ;;  %v367_v41 = vmul.f32 -1.442695, %v207_v37  ;;  %v368_v42 = vmul.f32 -1.442695, %v210_v38 }
  0x67   : > { %v369_v43 = vmul.f32 -1.442695, %v213_v39 }
  0x68   : > { %445 = vpow2.f32 %v366_v40 }
  0x69   : > { %447 = vpow2.f32 %v367_v41 }
  0x6a   : > { %449 = vpow2.f32 %v368_v42 }
  0x6b   : > { %451 = vpow2.f32 %v369_v43 }
  0x72   : > { %v446_v44 = vpop.eup %445 }
  0x73   : > { %v448_v45 = vpop.eup %447  ;;  %v226_v46 = vadd.f32 1.0, %v446_v44 }
  0x74   : > { %v450_v47 = vpop.eup %449  ;;  %v227_v48 = vadd.f32 1.0, %v448_v45 }
  0x75   : > { %v452_v49 = vpop.eup %451  ;;  %453 = vrcp.f32 %v226_v46  ;;  %v228_v50 = vadd.f32 1.0, %v450_v47 }
  0x76   : > { %455 = vrcp.f32 %v227_v48  ;;  %v229_v51 = vadd.f32 1.0, %v452_v49 }
  0x77   : > { %457 = vrcp.f32 %v228_v50 }
  0x78   : > { %459 = vrcp.f32 %v229_v51 }
  0x7f   : > { %v454_v52 = vpop.eup %453 }
  0x80   : > { %v456_v53 = vpop.eup %455  ;;  %v238_v54 = vmul.f32 %v454_v52, %v204_v36 }
  0x81   : > { %v458_v55 = vpop.eup %457  ;;  %v239_v56 = vmul.f32 %v456_v53, %v207_v37 }
  0x82   : > { %v460_v57 = vpop.eup %459  ;;  %242 = vst [vmem:[%s161_s16] sm:$0xf] %v238_v54  ;;  %v240_v58 = vmul.f32 %v458_v55, %v210_v38 }
  0x83   : > { %243 = vst [vmem:[%s161_s16 + $0x4] sm:$0xf] %v239_v56  ;;  %v241_v59 = vmul.f32 %v460_v57, %v213_v39 }
  0x84   : > { %244 = vst [vmem:[%s161_s16 + $0x8] sm:$0xf] %v240_v58 }
  0x85   : > { %245 = vst [vmem:[%s161_s16 + $0xc] sm:$0xf] %v241_v59 }
  0x86   : > { %526 = shalt.err (!%p523_p13)
}
  0x87   : > { %s527_s4 = scalar_lea.hbm %s769_s22, 256  ;;  %s531_s10 = scalar_lea.hbm %s820_s3, 512 }
  0x88   : > { %p528_p12 = scmp.ne.s32.totalorder %s769_s22, %s527_s4  ;;  %p532_p6 = scmp.lt.u32.totalorder %s769_s22, %s820_s3 }
  0x89   : > { %p533_p9 = scmp.lt.u32.totalorder %s531_s10, %s527_s4  ;;  %p535_p2 = scmp.lt.u32.totalorder %s527_s4, %s769_s22 }
  0x8a   : > { %p529_p1 = pnand %p528_p12, %p829_p3 }
  0x8b   : > { %p534_p11 = por %p533_p9, %p532_p6 }
  0x8c   : > { %p530_p4 = pneg %p529_p1 }
  0x8d   : > { %p536_p5 = por %p535_p2, %p534_p11 }
  0x8f   : > { %p537_p8 = pnand %p536_p5, %p530_p4 }
  0x91   : > { %540 = shalt.err (!%p537_p8)
}
  0x92   : > { %s605_s14 = smov 64   ;;  %s606_s15 = smov 4  }
  0x93   : > { %379 = dma.vmem_to_hbm [thread:$0]  (%p829_p3), %s764_s17, 256, %s769_s22, %s247_s28, %s605_s14, %s605_s14, %s606_s15  }
  0x94 PF: > { %s276_s16 = sand.u32 1, %s577_s0   ;;  %p830_p0 = scmp.ne.s32.totalorder %s826_s13, 0 }
  0x95   : > { %p831_p7 = scmp.ge.s32.totalorder %s597_s30, 2  ;;  %s277_s20 = scalar_lea.sflag [#allocation7], %s276_s16 }
  0x97   : > { %p386_p10 = pnand %p831_p7, %p830_p0 }
  0x99   : > { %572 = dma.done.wait (!%p386_p10), %s277_s20, 256  }
  0x9a   : > { %574 = vsyncadd (!%p386_p10), %s277_s20, 4294967040  ;;  %s27_s30 = sadd.s32 1, %s597_s30   ;;  %s832_s0 = smov %s581_s1 }
  0x9b   : > { %p24_p13 = scmp.ge.s32.totalorder %s27_s30, 4   ;;  %s833_s1 = smov %s585_s27 }
  0x9c   : > { %s834_s27 = smov %s698_s12  ;;  %s835_s28 = smov %s593_s29 }
  0x9d   : > { %s836_s29 = smov %s838_s6  ;;  %26 = sbr.rel (!%p24_p13) target bundleno = 28 (0x1c), region = 69 }
  0xa4   :  { %282 = vsyncpa [#allocation6], 1 }
  0xa5   :  { %284 = vsyncpa [#allocation6 + $0x1], 1 }
  0xa6   :  { %285 = vsyncpa [#allocation7], 1 }
  0xa7   :  { %287 = vsyncpa [#allocation7 + $0x1], 1 }

</bundles_post_ra>
